<compile_context>
chip_gen: v6e
topology: v6e:2x2x1
jax: 0.10.0
libtpu: 0.0.40
codegen_flags: <defaults>
</compile_context>

<pallas_src>
import math
import jax
import jax.numpy as jnp
from jax.experimental import pallas as pl
from jax.experimental.pallas import tpu as pltpu


def _triple(v):
    return tuple(v) if isinstance(v, (tuple, list)) else (v, v, v)


def _round_up(x, m):
    return ((x + m - 1) // m) * m


def _pick_tile(size, candidates=(512, 256, 128)):
    """Pad `size` up to a multiple of 128 and pick the largest tile in
    `candidates` that divides the padded size (128 always works)."""
    padded = _round_up(size, 128)
    for t in candidates:
        if padded % t == 0:
            return t, padded
    return 128, padded


# ----------------------------------------------------------------------------
# Pallas kernel: tiled grouped GEMM + bias  (the im2col x weight hot path)
#   grid = (G, N, O_tiles, K_tiles), K innermost ("arbitrary") with an f32
#   accumulator in VMEM scratch; bias is added only on the last K tile.
# ----------------------------------------------------------------------------
def _gemm_bias_kernel(w_ref, cols_ref, b_ref, out_ref, acc_ref):
    k = pl.program_id(3)

    @pl.when(k == 0)
    def _init():
        acc_ref[...] = jnp.zeros_like(acc_ref)

    # (Cog_p, TK) bf16 x (TK, TO) bf16 -> f32 accumulate on the MXU.
    acc_ref[...] += jnp.dot(w_ref[0], cols_ref[0, 0],
                            preferred_element_type=jnp.float32)

    @pl.when(k == pl.num_programs(3) - 1)
    def _finalize():
        res = acc_ref[...] + b_ref[0]            # bias (Cog_p, 1) broadcasts
        out_ref[...] = res[None, None, :, :].astype(out_ref.dtype)


def _pallas_grouped_gemm(weight_g, cols_g, bias_g, to_tile, tk_tile):
    """weight_g: (G, Cog_p, Kg_p) bf16   cols_g: (N, G, Kg_p, O_p) bf16
       bias_g:   (G, Cog_p, 1)    f32   ->  (N, G, Cog_p, O_p) f32"""
    G, Cog_p, Kg_p = weight_g.shape
    N, _, _, O_p = cols_g.shape
    k_tiles = Kg_p // tk_tile
    o_tiles = O_p // to_tile

    flops = int(2 * N * G * Cog_p * Kg_p * O_p)
    bytes_accessed = int(cols_g.size * 2 + weight_g.size * 2
                         + bias_g.size * 4 + N * G * Cog_p * O_p * 4)

    return pl.pallas_call(
        _gemm_bias_kernel,
        out_shape=jax.ShapeDtypeStruct((N, G, Cog_p, O_p), jnp.float32),
        grid_spec=pltpu.PrefetchScalarGridSpec(
            num_scalar_prefetch=0,
            grid=(G, N, o_tiles, k_tiles),
            in_specs=[
                # weight tile: independent of n and the O tile -> stays resident
                pl.BlockSpec((1, Cog_p, tk_tile), lambda g, n, o, k: (g, 0, k)),
                pl.BlockSpec((1, 1, tk_tile, to_tile),
                             lambda g, n, o, k: (n, g, k, o)),
                pl.BlockSpec((1, Cog_p, 1), lambda g, n, o, k: (g, 0, 0)),
            ],
            out_specs=pl.BlockSpec((1, 1, Cog_p, to_tile),
                                   lambda g, n, o, k: (n, g, 0, o)),
            scratch_shapes=[pltpu.VMEM((Cog_p, to_tile), jnp.float32)],
        ),
        compiler_params=pltpu.CompilerParams(
            dimension_semantics=("parallel", "parallel", "parallel", "arbitrary")),
        cost_estimate=pl.CostEstimate(flops=flops, transcendentals=0,
                                      bytes_accessed=bytes_accessed),
    )(weight_g, cols_g, bias_g)


# ----------------------------------------------------------------------------
# Plain (non-deformable) im2col: fast path for the conv_offset pass.
# Pure strided slicing — no gather, no trilinear weights.
# ----------------------------------------------------------------------------
def _plain_im2col_3d(x, kernel_size, stride, padding, dilation):
    N, C, D, H, W = x.shape
    kd, kh, kw = kernel_size
    sd, sh, sw = stride
    pd, ph, pw = padding
    dd, dh, dw = dilation

    Do = (D + 2 * pd - (dd * (kd - 1) + 1)) // sd + 1
    Ho = (H + 2 * ph - (dh * (kh - 1) + 1)) // sh + 1
    Wo = (W + 2 * pw - (dw * (kw - 1) + 1)) // sw + 1
    O = Do * Ho * Wo

    xp = jnp.pad(x, ((0, 0), (0, 0), (pd, pd), (ph, ph), (pw, pw)))
    patches = []
    for id_ in range(kd):
        for ih in range(kh):
            for iw in range(kw):
                d0, h0, w0 = id_ * dd, ih * dh, iw * dw
                sl = xp[:, :,
                        d0:d0 + sd * (Do - 1) + 1:sd,
                        h0:h0 + sh * (Ho - 1) + 1:sh,
                        w0:w0 + sw * (Wo - 1) + 1:sw]
                patches.append(sl.reshape(N, C, 1, O))
    cols = jnp.concatenate(patches, axis=2)          # (N, C, kvol, O)
    return cols.astype(jnp.float32), (Do, Ho, Wo)


# ----------------------------------------------------------------------------
# Deformable trilinear im2col (plain JAX glue: data-dependent gather)
# ----------------------------------------------------------------------------
def _deform_im2col_3d(x, offset, kernel_size, stride, padding, dilation, dg):
    N, C, D, H, W = x.shape
    kd, kh, kw = kernel_size
    sd, sh, sw = stride
    pd, ph, pw = padding
    dd, dh, dw = dilation
    kvol = kd * kh * kw

    Do = (D + 2 * pd - (dd * (kd - 1) + 1)) // sd + 1
    Ho = (H + 2 * ph - (dh * (kh - 1) + 1)) // sh + 1
    Wo = (W + 2 * pw - (dw * (kw - 1) + 1)) // sw + 1
    O = Do * Ho * Wo

    x = x.astype(jnp.float32)

    # base sampling positions per kernel tap / output location
    base_d = (jnp.arange(Do) * sd - pd)[None, :] + (jnp.arange(kd) * dd)[:, None]
    base_h = (jnp.arange(Ho) * sh - ph)[None, :] + (jnp.arange(kh) * dh)[:, None]
    base_w = (jnp.arange(Wo) * sw - pw)[None, :] + (jnp.arange(kw) * dw)[:, None]

    # offset layout: (N, dg, kd, kh, kw, 3[dd, dh, dw], Do, Ho, Wo)
    # TODO(synk): non-zero-offset channel ordering vs the CUDA DCN layout is
    # unverified (the reference module only exercises zero offsets here).
    off = offset.reshape(N, dg, kd, kh, kw, 3, Do, Ho, Wo).astype(jnp.float32)

    p_d = base_d[None, None, :, None, None, :, None, None] + off[:, :, :, :, :, 0]
    p_h = base_h[None, None, None, :, None, None, :, None] + off[:, :, :, :, :, 1]
    p_w = base_w[None, None, None, None, :, None, None, :] + off[:, :, :, :, :, 2]

    d0 = jnp.floor(p_d)
    h0 = jnp.floor(p_h)
    w0 = jnp.floor(p_w)

    cpg = C // dg                                    # channels per deformable group
    x_g = x.reshape(N, dg, cpg, D * H * W)

    def corner(di, hi, wi):
        wgt = ((1.0 - jnp.abs(p_d - di)) *
               (1.0 - jnp.abs(p_h - hi)) *
               (1.0 - jnp.abs(p_w - wi)))
        valid = ((di >= 0) & (di < D) & (hi >= 0) & (hi < H) &
                 (wi >= 0) & (wi < W)).astype(jnp.float32)
        idx = (jnp.clip(di, 0, D - 1).astype(jnp.int32) * H
               + jnp.clip(hi, 0, H - 1).astype(jnp.int32)) * W \
              + jnp.clip(wi, 0, W - 1).astype(jnp.int32)
        idx = idx.reshape(N, dg, 1, kvol * O)        # shared across cpg channels
        vals = jnp.take_along_axis(x_g, idx, axis=3)           # (N, dg, cpg, kvol*O)
        wmask = (wgt * valid).reshape(N, dg, 1, kvol * O)
        return vals * wmask

    cols = jnp.zeros((N, dg, cpg, kvol * O), jnp.float32)
    for di in (d0, d0 + 1.0):
        for hi in (h0, h0 + 1.0):
            for wi in (w0, w0 + 1.0):
                cols = cols + corner(di, hi, wi)

    return cols.reshape(N, C, kvol, O), (Do, Ho, Wo)


# ----------------------------------------------------------------------------
# Deformable conv 3D forward (im2col + Pallas tiled grouped GEMM)
# ----------------------------------------------------------------------------
def deform_conv3d(x, offset, weight, bias, stride, padding, dilation,
                  groups, deformable_groups, zero_offset_fast_path=False):
    N, C, D, H, W = x.shape
    Cout, Cig, kd, kh, kw = weight.shape
    kvol = kd * kh * kw

    if zero_offset_fast_path:
        cols, (Do, Ho, Wo) = _plain_im2col_3d(
            x, (kd, kh, kw), stride, padding, dilation)
    else:
        assert offset.shape[1] == 3 * deformable_groups * kvol
        cols, (Do, Ho, Wo) = _deform_im2col_3d(
            x, offset, (kd, kh, kw), stride, padding, dilation,
            deformable_groups)
    O = Do * Ho * Wo

    G = groups
    Cog = Cout // G
    Kg = Cig * kvol

    # Padded, lane-dense bf16 layout for the Pallas GEMM.
    Cog_p = _round_up(Cog, 8)
    to_tile, O_p = _pick_tile(O)
    tk_tile, Kg_p = _pick_tile(Kg)

    cols_g = cols.reshape(N, G, Kg, O)
    cols_g = jnp.pad(cols_g, ((0, 0), (0, 0), (0, Kg_p - Kg), (0, O_p - O)))
    cols_g = cols_g.astype(jnp.bfloat16)

    weight_g = weight.reshape(G, Cog, Kg)
    weight_g = jnp.pad(weight_g, ((0, 0), (0, Cog_p - Cog), (0, Kg_p - Kg)))
    weight_g = weight_g.astype(jnp.bfloat16)

    bias_g = jnp.pad(bias.reshape(G, Cog), ((0, 0), (0, Cog_p - Cog)))
    bias_g = bias_g.astype(jnp.float32)[..., None]            # (G, Cog_p, 1)

    out = _pallas_grouped_gemm(weight_g, cols_g, bias_g, to_tile, tk_tile)
    out = out[:, :, :Cog, :O].reshape(N, Cout, Do, Ho, Wo)
    return out


# ----------------------------------------------------------------------------
# DeformConvPack module (deterministic parameter init in-script)
# ----------------------------------------------------------------------------
class DeformConvPackPallas:
    def __init__(self, in_channels, out_channels, kernel_size, stride, padding,
                 dilation=1, groups=1, deformable_groups=1, im2col_step=64,
                 bias=True, key=None):
        self.in_channels = in_channels
        self.out_channels = out_channels
        self.kernel_size = _triple(kernel_size)
        self.stride = _triple(stride)
        self.padding = _triple(padding)
        self.dilation = _triple(dilation)
        self.groups = groups
        self.deformable_groups = deformable_groups
        self.im2col_step = im2col_step  # TODO(synk): CUDA batching knob, no-op on TPU
        kd, kh, kw = self.kernel_size
        kvol = kd * kh * kw

        # main deform-conv parameters: kaiming_uniform(a=sqrt(5)) == U(-1/sqrt(fan_in), ...)
        fan_in = (in_channels // groups) * kvol
        bound = 1.0 / math.sqrt(fan_in)
        kw_key, kb_key = jax.random.split(key if key is not None else jax.random.PRNGKey(0))
        self.weight = jax.random.uniform(
            kw_key, (out_channels, in_channels // groups, kd, kh, kw),
            jnp.float32, -bound, bound)
        self.bias = jax.random.uniform(
            kb_key, (out_channels,), jnp.float32, -bound, bound)

        # conv_offset (standard Conv3d) — zero-initialized, as in init_offset()
        off_ch = deformable_groups * 3 * kvol
        self.w_off = jnp.zeros((off_ch, in_channels, kd, kh, kw), jnp.float32)
        self.b_off = jnp.zeros((off_ch,), jnp.float32)

    def __call__(self, x):
        # conv_offset is a plain Conv3d (dilation=1, exactly as in the PyTorch
        # module) -> non-deformable fast-path im2col + the same Pallas GEMM.
        offset = deform_conv3d(x, None, self.w_off, self.b_off,
                               self.stride, self.padding, (1, 1, 1),
                               groups=1, deformable_groups=1,
                               zero_offset_fast_path=True)
        # main deformable convolution
        return deform_conv3d(x, offset, self.weight, self.bias,
                             self.stride, self.padding, self.dilation,
                             self.groups, self.deformable_groups)


if __name__ == "__main__":
    key = jax.random.PRNGKey(0)
    kx, kparam = jax.random.split(key)

    # small 3D input: (N=2, C=4, D=4, H=8, W=8)
    x = jax.random.normal(kx, (2, 4, 4, 8, 8), jnp.float32)

    model = DeformConvPackPallas(in_channels=4, out_channels=8, kernel_size=3,
                                 stride=1, padding=1, dilation=1, groups=1,
                                 deformable_groups=1, bias=True, key=kparam)

    out = jax.block_until_ready(model(x))
    assert out.shape == (2, 8, 4, 8, 8), out.shape

    # sanity: conv_offset is zero-initialized, so offsets are 0 and the result
    # must equal a standard (zero-padded) 3D convolution.  The Pallas GEMM
    # runs with bf16 inputs + f32 accumulation, so the reference uses
    # bf16-rounded inputs with f32 accumulation as well.
    x_bf = x.astype(jnp.bfloat16)
    w_bf = model.weight.astype(jnp.bfloat16)
    ref = jax.lax.conv_general_dilated(
        x_bf, w_bf, window_strides=(1, 1, 1), padding=[(1, 1)] * 3,
        dimension_numbers=("NCDHW", "OIDHW", "NCDHW"),
        preferred_element_type=jnp.float32)
    ref = ref + model.bias[None, :, None, None, None]
    assert jnp.allclose(out, ref, atol=1e-3, rtol=1e-3), \
        float(jnp.max(jnp.abs(out - ref)))

    print("KERNEL_OK")
</pallas_src>

<mosaic_0001>
module attributes {stable_mosaic.version = 11 : i64} {
  func.func @_gemm_bias_kernel(%arg0: i32, %arg1: i32, %arg2: i32, %arg3: i32, %arg4: memref<1x88x128xbf16, #tpu.memory_space<vmem>>, %arg5: memref<1x1x128x256xbf16, #tpu.memory_space<vmem>>, %arg6: memref<1x88x1xf32, #tpu.memory_space<vmem>>, %arg7: memref<1x1x88x256xf32, #tpu.memory_space<vmem>>, %arg8: memref<88x256xf32, #tpu.memory_space<vmem>>) attributes {dimension_semantics = [#tpu.dimension_semantics<parallel>, #tpu.dimension_semantics<parallel>, #tpu.dimension_semantics<parallel>, #tpu.dimension_semantics<arbitrary>], iteration_bounds = array<i64: 1, 2, 1, 1>, scalar_prefetch = 0 : i64, scratch_operands = 1 : i64, tpu.core_type = #tpu.core_type<tc>, window_params = [{transform_indices = @transform_0, window_bounds = array<i64: 1, 88, 128>}, {transform_indices = @transform_1, window_bounds = array<i64: 1, 1, 128, 256>}, {transform_indices = @transform_2, window_bounds = array<i64: 1, 88, 1>}, {transform_indices = @transform_3, window_bounds = array<i64: 1, 1, 88, 256>}]} {
    %c0_i32 = arith.constant 0 : i32
    %0 = arith.cmpi eq, %arg3, %c0_i32 : i32
    %1 = arith.extui %0 : i1 to i32
    %c0_i32_0 = arith.constant 0 : i32
    %2 = arith.cmpi ne, %1, %c0_i32_0 : i32
    scf.if %2 {
      %cst_13 = arith.constant 0.000000e+00 : f32
      %14 = vector.broadcast %cst_13 : f32 to vector<88x256xf32>
      %c0_14 = arith.constant 0 : index
      %c0_15 = arith.constant 0 : index
      %15 = vector.load %arg8[%c0_14, %c0_15] : memref<88x256xf32, #tpu.memory_space<vmem>>, vector<88x256xf32>
      tpu.vector_store %arg8[%c0_14, %c0_15], %14 {strides = array<i32>} : memref<88x256xf32, #tpu.memory_space<vmem>>, vector<88x256xf32>,
    } else {
    }
    %c0 = arith.constant 0 : index
    %c0_1 = arith.constant 0 : index
    %3 = vector.load %arg8[%c0, %c0_1] : memref<88x256xf32, #tpu.memory_space<vmem>>, vector<88x256xf32>
    %c0_2 = arith.constant 0 : index
    %c0_3 = arith.constant 0 : index
    %c0_4 = arith.constant 0 : index
    %4 = vector.load %arg4[%c0_2, %c0_3, %c0_4] : memref<1x88x128xbf16, #tpu.memory_space<vmem>>, vector<1x88x128xbf16>
    %5 = vector.shape_cast %4 : vector<1x88x128xbf16> to vector<88x128xbf16>
    %c0_5 = arith.constant 0 : index
    %c0_6 = arith.constant 0 : index
    %c0_7 = arith.constant 0 : index
    %c0_8 = arith.constant 0 : index
    %6 = vector.load %arg5[%c0_5, %c0_6, %c0_7, %c0_8] : memref<1x1x128x256xbf16, #tpu.memory_space<vmem>>, vector<1x1x128x256xbf16>
    %7 = vector.shape_cast %6 : vector<1x1x128x256xbf16> to vector<128x256xbf16>
    %cst = arith.constant dense<0.000000e+00> : vector<88x256xf32>
    %8 = tpu.matmul %5, %7, %cst {dimension_numbers = #tpu.dot_dimension_numbers<[1], [0], [0], [1], [0, 0, 1, 1], [], []>} : vector<88x128xbf16>, vector<128x256xbf16>, vector<88x256xf32> -> vector<88x256xf32>
    %9 = arith.addf %3, %8 : vector<88x256xf32>
    %c0_9 = arith.constant 0 : index
    %c0_10 = arith.constant 0 : index
    %10 = vector.load %arg8[%c0_9, %c0_10] : memref<88x256xf32, #tpu.memory_space<vmem>>, vector<88x256xf32>
    tpu.vector_store %arg8[%c0_9, %c0_10], %9 {strides = array<i32>} : memref<88x256xf32, #tpu.memory_space<vmem>>, vector<88x256xf32>,
    %c0_i32_11 = arith.constant 0 : i32
    %11 = arith.cmpi eq, %arg3, %c0_i32_11 : i32
    %12 = arith.extui %11 : i1 to i32
    %c0_i32_12 = arith.constant 0 : i32
    %13 = arith.cmpi ne, %12, %c0_i32_12 : i32
    scf.if %13 {
      %c0_13 = arith.constant 0 : index
      %c0_14 = arith.constant 0 : index
      %14 = vector.load %arg8[%c0_13, %c0_14] : memref<88x256xf32, #tpu.memory_space<vmem>>, vector<88x256xf32>
      %c0_15 = arith.constant 0 : index
      %c0_16 = arith.constant 0 : index
      %c0_17 = arith.constant 0 : index
      %15 = vector.load %arg6[%c0_15, %c0_16, %c0_17] : memref<1x88x1xf32, #tpu.memory_space<vmem>>, vector<1x88x1xf32>
      %16 = vector.shape_cast %15 : vector<1x88x1xf32> to vector<88x1xf32>
      %17 = vector.broadcast %16 : vector<88x1xf32> to vector<88x256xf32>
      %18 = arith.addf %14, %17 : vector<88x256xf32>
      %19 = vector.shape_cast %18 : vector<88x256xf32> to vector<1x1x88x256xf32>
      %c0_18 = arith.constant 0 : index
      %c0_19 = arith.constant 0 : index
      %c0_20 = arith.constant 0 : index
      %c0_21 = arith.constant 0 : index
      %20 = vector.load %arg7[%c0_18, %c0_19, %c0_20, %c0_21] : memref<1x1x88x256xf32, #tpu.memory_space<vmem>>, vector<1x1x88x256xf32>
      tpu.vector_store %arg7[%c0_18, %c0_19, %c0_20, %c0_21], %19 {strides = array<i32>} : memref<1x1x88x256xf32, #tpu.memory_space<vmem>>, vector<1x1x88x256xf32>,
    } else {
    }
    return
  }
  func.func @transform_0(%arg0: i32, %arg1: i32, %arg2: i32, %arg3: i32) -> (i32, i32, i32) {
    %c0_i32 = arith.constant 0 : i32
    %c0_i32_0 = arith.constant 0 : i32
    return %arg0, %c0_i32, %arg3 : i32, i32, i32
  }
  func.func @transform_1(%arg0: i32, %arg1: i32, %arg2: i32, %arg3: i32) -> (i32, i32, i32, i32) {
    %c0_i32 = arith.constant 0 : i32
    return %arg1, %arg0, %arg3, %arg2 : i32, i32, i32, i32
  }
  func.func @transform_2(%arg0: i32, %arg1: i32, %arg2: i32, %arg3: i32) -> (i32, i32, i32) {
    %c0_i32 = arith.constant 0 : i32
    %c0_i32_0 = arith.constant 0 : i32
    %c0_i32_1 = arith.constant 0 : i32
    return %arg0, %c0_i32, %c0_i32_0 : i32, i32, i32
  }
  func.func @transform_3(%arg0: i32, %arg1: i32, %arg2: i32, %arg3: i32) -> (i32, i32, i32, i32) {
    %c0_i32 = arith.constant 0 : i32
    %c0_i32_0 = arith.constant 0 : i32
    return %arg1, %arg0, %c0_i32, %arg2 : i32, i32, i32, i32
  }
}

</mosaic_0001>

<bundles_post_ra>
// kernel: tpu_custom_call.1
= control target key start
LH: loop header
LB: loop body
LE: loop exit
PB: predicated region body
PF: predicated region fallthrough
CT: control target
= control target key end

     0   :  { %8 = vsyncpa [#allocation4], 0  ;;  %s1447_s0 = inlined_call_operand.vmem [shape: bf16[1,88,128], index: 0, kind: input, shape index: {}]   ;;  %s1448_s1 = inlined_call_operand.hbm [shape: bf16[2,1,128,256], index: 1, kind: input, shape index: {}]   ;;  %s1449_s2 = inlined_call_operand.vmem [shape: f32[1,88,1], index: 2, kind: input, shape index: {}]   ;;  %s1450_s3 = inlined_call_operand.hbm [shape: f32[2,1,88,256], index: 3, kind: output, shape index: {}]  }
   0x1   :  { %10 = vsyncpa [#allocation4 + $0x1], 0 }
   0x2   :  { %11 = vsyncpa [#allocation5], 0 }
   0x3   :  { %13 = vsyncpa [#allocation5 + $0x1], 0  ;;  %s1190_s12 = smov 0   ;;  %s1192_s13 = smov 0  }
   0x4   :  { %s1194_s14 = smov 0   ;;  %s1196_s15 = smov 0  }
   0x5   :  { %s1198_s16 = smov 0   ;;  %s1200_s17 = smov 0  }
   0x6 LB: > { %s899_s18 = sadd.s32 4294967295, %s1161_s17   ;;  %s900_s19 = sadd.s32 4294967294, %s1161_s17   ;;  %s1161_s17 = sphi %s1200_s17, %s19_s17   ;;  %s1157_s16 = sphi %s1198_s16, %s1461_s16   ;;  %s1153_s15 = sphi %s1196_s15, %s1460_s15   ;;  %s1149_s14 = sphi %s1194_s14, %s1459_s14   ;;  %s1145_s13 = sphi %s1192_s13, %s1458_s13   ;;  %s1141_s12 = sphi %s1190_s12, %s1457_s12  }
   0x7   : > { %s41_s20 = sadd.s32 1, %s1157_s16  ;;  %s86_s21 = sadd.s32 1, %s1149_s14 }
   0x8   : > { %p43_p0 = scmp.ge.s32.totalorder %s41_s20, 2  ;;  %p93_p1 = scmp.ne.s32.totalorder %s1149_s14, %s1145_s13 }
   0x9   : > { %p94_p2 = scmp.eq.s32.totalorder %s1161_s17, 0  ;;  %p99_p3 = scmp.ne.s32.totalorder %s1145_s13, %s1141_s12 }
   0xa   : > { %s1463_s20 = smov (%p43_p0, %s41_s20), 0  ;;  %p100_p5 = scmp.eq.s32.totalorder %s899_s18, 0 }
   0xb   : > { %p1231_p4 = por %p94_p2, %p93_p1  ;;  %s77_s23 = ssub.s32 %s1157_s16, %s1463_s20 }
   0xc   : > { %p153_p6 = scmp.eq.s32.totalorder %s899_s18, 1  ;;  %p84_p7 = scmp.eq.s32.totalorder %s77_s23, 0 }
   0xd   : > { %p1237_p8 = por %p100_p5, %p99_p3  ;;  %p159_p10 = scmp.eq.s32.totalorder %s900_s19, 1 }
   0xe   : > { %p1241_p9 = por %p153_p6, %p93_p1  ;;  %p966_p13 = scmp.lt.s32.totalorder %s1161_s17, 2 }
   0xf   : > { %s1246_s26 = scalar_select %p84_p7, %s1149_s14, %s86_s21  }
  0x10   : > { %p1248_p11 = por %p159_p10, %p99_p3  ;;  %s198_s28 = sand.u32 1, %s1149_s14  }
  0x11   : > { %s905_s29 = sshll.u32 %s198_s28, 7  ;;  %s935_s30 = sshll.u32 %s1157_s16, 11 }
  0x12   : > { %s215_s6 = scalar_lea.hbm %s1448_s1, %s935_s30  ;;  %s202_s7 = scalar_lea.vmem [#allocation3], %s905_s29 }
  0x13   : > { %s216_s8 = sshll.u32 %s202_s7, 4  ;;  %p1261_p0 = pnand %p966_p13, %p1231_p4  ;;  %s217_s8 = int_to_ptr.vmem [resolvable:$true] %s216_s8 }
  0x14   : > { %p908_p1 = scmp.ge.s32.totalorder %s1161_s17, 1  ;;  %s199_s10 = scalar_lea.sflag [#allocation4], %s198_s28 }
  0x15   : > { %p1055_p2 = pneg %p1261_p0  ;;  %s1066_s11 = scalar_lea.vmem %s217_s8, 2048 }
  0x16   : > { %p1067_p3 = scmp.ne.s32.totalorder %s217_s8, %s1066_s11  ;;  %s1163_s18 = smov [#allocation3]  }
  0x17   : > { %s1071_s19 = sshll.u32 %s1163_s18, 4  ;;  %s1072_s19 = int_to_ptr.vmem [resolvable:$false] %s1071_s19 }
  0x18   : > { %p1069_p5 = pnand %p1067_p3, %p1055_p2  ;;  %s1073_s21 = scalar_lea.vmem %s1072_s19, 4096 }
  0x19   : > { %p1074_p7 = scmp.lt.s32.totalorder %s217_s8, %s1072_s19  ;;  %p1075_p10 = scmp.lt.s32.totalorder %s1073_s21, %s1066_s11 }
  0x1a   : > { %p1070_p6 = pneg %p1069_p5 }
  0x1b   : > { %p1076_p12 = por %p1075_p10, %p1074_p7 }
  0x1d   : > { %p1077_p4 = pnand %p1076_p12, %p1070_p6 }
  0x1f   : > { %1080 = shalt.err (!%p1077_p4)
}
  0x20   : > { %s1164_s22 = smov 128   ;;  %s1165_s23 = smov 8  }
  0x21   : > { %961 = dma.hbm_to_vmem [thread:$0]  (!%p1261_p0), %s215_s6, 2048, %s217_s8, %s199_s10, %s1164_s22, %s1164_s22, %s1165_s23  }
  0x22   : > { %p224_p13 = scmp.lt.s32.totalorder %s1161_s17, 3 }
  0x24   : > { %p225_p2 = pnand %p908_p1, %p224_p13 }
  0x25   : > { %s1274_s28 = sand.u32 (!%p225_p2), 1, %s1145_s13  }
  0x26   : > { %228 = sbr.rel (%p225_p2) target bundleno = 310 (0x136), region = 32  ;;  %s909_s29 = sshll.u32 (!%p225_p2), %s1274_s28, 7 }
  0x27   : > { %s231_s30 = scalar_lea.sflag (!%p225_p2), [#allocation4], %s1274_s28  ;;  %s1278_s4 = scalar_lea.vmem (!%p225_p2), [#allocation3], %s909_s29 }
  0x2b   : > { %1132 = dma.done.wait (%p1237_p8), %s231_s30, 2048  }
  0x2c   : > { %1134 = vsyncadd (%p1237_p8), %s231_s30, 4294965248  ;;  %v1166_v0 = vmov 0   ;;  %v1023_v1 = vld [vmem:[%s1278_s4 + $0x74] ss:$8 sps:$4 sm:$0xff]   ;;  %v1025_v2 = vld [vmem:[%s1278_s4 + $0x70] ss:$8 sps:$4 sm:$0xff]  }
  0x2d   : > { %508 = vmatprep.mubr.bf16.mxu0 %v1166_v0  ;;  %538 = vmatprep.mubr.bf16.mxu1 %v1166_v0  ;;  %v1026_v3 = vld [vmem:[%s1278_s4 + $0x64] ss:$8 sps:$4 sm:$0xff]   ;;  %v1028_v4 = vld [vmem:[%s1278_s4 + $0x60] ss:$8 sps:$4 sm:$0xff]   ;;  %v1029_v5 = vld [vmem:[%s1278_s4 + $0x54] ss:$8 sps:$4 sm:$0xff]  }
  0x2e   : > { %1021 = vset.pattern.permute.xlu0 %v1166_v0  ;;  %1022 = vset.pattern.permute.xlu1 %v1166_v0  ;;  %v1031_v6 = vld [vmem:[%s1278_s4 + $0x50] ss:$8 sps:$4 sm:$0xff]   ;;  %v1032_v7 = vld [vmem:[%s1278_s4 + $0x44] ss:$8 sps:$4 sm:$0xff]   ;;  %v1034_v8 = vld [vmem:[%s1278_s4 + $0x40] ss:$8 sps:$4 sm:$0xff]  }
  0x2f   : > { %476 = vmatprep.subr.bf16.mxu0 %v1023_v1  ;;  %936 = vmatprep.subr.bf16.mxu1 %v1023_v1  ;;  %v1035_v9 = vld [vmem:[%s1278_s4 + $0x34] ss:$8 sps:$4 sm:$0xff]   ;;  %v1037_v10 = vld [vmem:[%s1278_s4 + $0x30] ss:$8 sps:$4 sm:$0xff]   ;;  %v1038_v11 = vld [vmem:[%s1278_s4 + $0x24] ss:$8 sps:$4 sm:$0xff]  }
  0x30   : > { %477 = vmatpush1.bf16.msra.mxu0 %v1025_v2  ;;  %944 = vmatpush1.bf16.msra.mxu1 %v1025_v2  ;;  %v636_v12 = vld [vmem:[%s1449_s2] sm:$0xff]  ;;  %v638_v13 = vld [vmem:[%s1449_s2 + $0x10] sm:$0xff]  ;;  %v637_v14 = vld [vmem:[%s1449_s2 + $0x8] sm:$0xff]  ;;  %s952_s7 = smul.u32 176, %s1274_s28  ;;  %s747_s18 = scalar_lea.sflag [#allocation5], %s1274_s28 }
  0x31   : > { %478 = vmatprep.subr.bf16.mxu0 %v1026_v3  ;;  %937 = vmatprep.subr.bf16.mxu1 %v1026_v3  ;;  %v1040_v15 = vld [vmem:[%s1278_s4 + $0x20] ss:$8 sps:$4 sm:$0xff]   ;;  %v639_v16 = vld [vmem:[%s1449_s2 + $0x18] sm:$0xff]  ;;  %v1044_v21 = vld [vmem:[%s1278_s4 + $0x4] ss:$8 sps:$4 sm:$0xff]   ;;  %s953_s9 = smul.u32 2816, %s1153_s15 }
  0x32   : > { %649 = vperm.xlu0 %1021, %v636_v12   ;;  %659 = vperm.xlu1 %1022, %v638_v13   ;;  %v1041_v17 = vld [vmem:[%s1278_s4 + $0x14] ss:$8 sps:$4 sm:$0xff]   ;;  %v640_v18 = vld [vmem:[%s1449_s2 + $0x20] sm:$0xff]  ;;  %v1043_v19 = vld [vmem:[%s1278_s4 + $0x10] ss:$8 sps:$4 sm:$0xff]   ;;  %s1364_s8 = scalar_lea.vmem [#allocation6], %s952_s7 }
  0x33   : > { %v641_v20 = vld [vmem:[%s1449_s2 + $0x28] sm:$0xff]  ;;  %v642_v22 = vld [vmem:[%s1449_s2 + $0x30] sm:$0xff]  ;;  %v643_v24 = vld [vmem:[%s1449_s2 + $0x38] sm:$0xff]  ;;  %s764_s10 = sshll.u32 %s1364_s8, 4  ;;  %s1394_s15 = scalar_lea.hbm %s1450_s3, %s953_s9  ;;  %s1396_s10 = int_to_ptr.vmem [resolvable:$true] %s764_s10 }
  0x34   : > { %479 = vmatpush1.bf16.msra.mxu0 %v1028_v4  ;;  %945 = vmatpush1.bf16.msra.mxu1 %v1028_v4  ;;  %v1046_v23 = vld [vmem:[%s1278_s4] ss:$8 sps:$4 sm:$0xff]   ;;  %v1048_v26 = vld [vmem:[%s1447_s0 + $0x18] sm:$0xff]   ;;  %v646_v29 = vld [vmem:[%s1449_s2 + $0x50] sm:$0xff]  ;;  %s1081_s19 = scalar_lea.vmem %s1396_s10, 2816  ;;  %s1167_s21 = smov [#allocation6]  }
  0x35   : > { %480 = vmatprep.subr.bf16.mxu0 %v1029_v5  ;;  %938 = vmatprep.subr.bf16.mxu1 %v1029_v5  ;;  %v1047_v25 = vld [vmem:[%s1447_s0] sm:$0xff]   ;;  %v645_v28 = vld [vmem:[%s1449_s2 + $0x48] sm:$0xff]  ;;  %v1051_v32 = vld [vmem:[%s1447_s0 + $0x10] sm:$0xff]   ;;  %p1082_p8 = scmp.ne.s32.totalorder %s1396_s10, %s1081_s19  ;;  %s1085_s22 = sshll.u32 %s1167_s21, 4  ;;  %s1086_s22 = int_to_ptr.vmem [resolvable:$false] %s1085_s22 }
  0x36   : > { %654 = vperm.xlu0 %1021, %v637_v14   ;;  %664 = vperm.xlu1 %1022, %v639_v16   ;;  %v644_v27 = vld [vmem:[%s1449_s2 + $0x40] sm:$0xff]  ;;  %v1049_v30 = vld [vmem:[%s1447_s0 + $0x8] sm:$0xff]   ;;  %s1087_s23 = scalar_lea.vmem %s1086_s22, 5632  ;;  %p1088_p1 = scmp.lt.s32.totalorder %s1396_s10, %s1086_s22 }
  0x37   : > { %v1050_v31 = vld [vmem:[%s1447_s0 + $0x20] sm:$0xff]   ;;  %v1052_v33 = vld [vmem:[%s1447_s0 + $0x28] ss:$0 sps:$4 sm:$0xff]   ;;  %p1083_p12 = pnand %p1082_p8, %p1241_p9  ;;  %p1089_p3 = scmp.lt.s32.totalorder %s1087_s23, %s1081_s19 }
  0x38   : > { %481 = vmatpush1.bf16.msra.mxu0 %v1031_v6  ;;  %946 = vmatpush1.bf16.msra.mxu1 %v1031_v6 }
  0x39   : > { %482 = vmatprep.subr.bf16.mxu0 %v1032_v7  ;;  %939 = vmatprep.subr.bf16.mxu1 %v1032_v7  ;;  %p1084_p0 = pneg %p1083_p12  ;;  %p1090_p5 = por %p1089_p3, %p1088_p1 }
  0x3a   : > { %669 = vperm.xlu0 %1021, %v640_v18   ;;  %674 = vperm.xlu1 %1022, %v641_v20  }
  0x3b   : > { %p1091_p6 = pnand %p1090_p5, %p1084_p0 }
  0x3c   : > { %483 = vmatpush1.bf16.msra.mxu0 %v1034_v8  ;;  %947 = vmatpush1.bf16.msra.mxu1 %v1034_v8 }
  0x3d   : > { %484 = vmatprep.subr.bf16.mxu0 %v1035_v9  ;;  %940 = vmatprep.subr.bf16.mxu1 %v1035_v9 }
  0x3e   : > { %679 = vperm.xlu0 %1021, %v642_v22   ;;  %684 = vperm.xlu1 %1022, %v643_v24  }
  0x40   : > { %485 = vmatpush1.bf16.msra.mxu0 %v1037_v10  ;;  %948 = vmatpush1.bf16.msra.mxu1 %v1037_v10 }
  0x41   : > { %486 = vmatprep.subr.bf16.mxu0 %v1038_v11  ;;  %941 = vmatprep.subr.bf16.mxu1 %v1038_v11 }
  0x42   : > { %689 = vperm.xlu0 %1021, %v644_v27   ;;  %694 = vperm.xlu1 %1022, %v645_v28  }
  0x44   : > { %487 = vmatpush1.bf16.msra.mxu0 %v1040_v15  ;;  %949 = vmatpush1.bf16.msra.mxu1 %v1040_v15 }
  0x45   : > { %488 = vmatprep.subr.bf16.mxu0 %v1041_v17  ;;  %942 = vmatprep.subr.bf16.mxu1 %v1041_v17 }
  0x46   : > { %699 = vperm.xlu0 %1021, %v646_v29  }
  0x48   : > { %489 = vmatpush1.bf16.msra.mxu0 %v1043_v19  ;;  %950 = vmatpush1.bf16.msra.mxu1 %v1043_v19 }
  0x49   : > { %490 = vmatprep.subr.bf16.mxu0 %v1044_v21  ;;  %943 = vmatprep.subr.bf16.mxu1 %v1044_v21 }
  0x4c   : > { %491 = vmatpush1.bf16.msra.mxu0 %v1046_v23  ;;  %951 = vmatpush1.bf16.msra.mxu1 %v1046_v23 }
  0x4f   : > { %509 = vmatmul.mubr.bf16.vlgmr.msra.gmra.mxu0 %v1047_v25  ;;  %539 = vmatmul.mubr.bf16.vlgmr.msra.gmra.mxu1 %v1048_v26 }
  0x50   : > { %518 = vmatprep.mubr.bf16.mxu0 %v1166_v0  ;;  %548 = vmatprep.mubr.bf16.mxu1 %v1166_v0 }
  0x57   : > { %519 = vmatmul.mubr.bf16.gmra.mxu0 %v1049_v30  ;;  %549 = vmatmul.mubr.bf16.gmra.mxu1 %v1050_v31 }
  0x58   : > { %528 = vmatprep.mubr.bf16.mxu0 %v1166_v0  ;;  %558 = vmatprep.mubr.bf16.mxu1 %v1166_v0 }
  0x5f   : > { %529 = vmatmul.mubr.bf16.gmra.mxu0 %v1051_v32  ;;  %559 = vmatmul.mubr.bf16.gmra.mxu1 %v1052_v33 }
  0xad   : > { %v650_v34 = vpop.permute.xlu0 %649  ;;  %v660_v35 = vpop.permute.xlu1 %659 }
  0xb1   : > { %v655_v36 = vpop.permute.xlu0 %654  ;;  %v665_v37 = vpop.permute.xlu1 %664 }
  0xb5   : > { %v1359_v38 = vpop.permute.xlu0 %669  ;;  %v1362_v39 = vpop.permute.xlu1 %674 }
  0xb9   : > { %v680_v40 = vpop.permute.xlu0 %679  ;;  %v685_v47 = vpop.permute.xlu1 %684 }
  0xbd   : > { %v690_v56 = vpop.permute.xlu0 %689  ;;  %v695_v1 = vpop.permute.xlu1 %694 }
  0xc1   : > { %v700_v10 = vpop.permute.xlu0 %699 }
 0x10f   : > { %v510_v41 = vpop.f32.mrf.mxu0  ;;  %v540_v42 = vpop.f32.mrf.mxu1 }
 0x110   : > { %v702_v43 = vadd.f32 %v650_v34, %v510_v41  ;;  %v714_v44 = vadd.f32 %v680_v40, %v540_v42 }
 0x111   : > { %v512_v45 = vpop.f32.mrf.mxu0  ;;  %v542_v46 = vpop.f32.mrf.mxu1 }
 0x112   : > { %724 = vst [vmem:[%s1364_s8] sm:$0xff] %v702_v43  ;;  %736 = vst [vmem:[%s1364_s8 + $0x60] sm:$0xff] %v714_v44  ;;  %v703_v48 = vadd.f32 %v650_v34, %v512_v45  ;;  %v715_v49 = vadd.f32 %v680_v40, %v542_v46 }
 0x113   : > { %v514_v50 = vpop.f32.mrf.mxu0  ;;  %v544_v51 = vpop.f32.mrf.mxu1 }
 0x114   : > { %725 = vst [vmem:[%s1364_s8 + $0x8] sm:$0xff] %v703_v48  ;;  %737 = vst [vmem:[%s1364_s8 + $0x68] sm:$0xff] %v715_v49  ;;  %v704_v52 = vadd.f32 %v655_v36, %v514_v50  ;;  %v716_v53 = vadd.f32 %v685_v47, %v544_v51 }
 0x115   : > { %v516_v54 = vpop.f32.mrf.mxu0  ;;  %v546_v55 = vpop.f32.mrf.mxu1 }
 0x116   : > { %726 = vst [vmem:[%s1364_s8 + $0x10] sm:$0xff] %v704_v52  ;;  %738 = vst [vmem:[%s1364_s8 + $0x70] sm:$0xff] %v716_v53  ;;  %v705_v57 = vadd.f32 %v655_v36, %v516_v54  ;;  %v717_v58 = vadd.f32 %v685_v47, %v546_v55 }
 0x117   : > { %v520_v59 = vpop.f32.mrf.mxu0  ;;  %v550_v60 = vpop.f32.mrf.mxu1 }
 0x118   : > { %727 = vst [vmem:[%s1364_s8 + $0x18] sm:$0xff] %v705_v57  ;;  %739 = vst [vmem:[%s1364_s8 + $0x78] sm:$0xff] %v717_v58  ;;  %v706_v61 = vadd.f32 %v660_v35, %v520_v59  ;;  %v718_v62 = vadd.f32 %v690_v56, %v550_v60 }
 0x119   : > { %v522_v63 = vpop.f32.mrf.mxu0  ;;  %v552_v0 = vpop.f32.mrf.mxu1 }
 0x11a   : > { %728 = vst [vmem:[%s1364_s8 + $0x20] sm:$0xff] %v706_v61  ;;  %740 = vst [vmem:[%s1364_s8 + $0x80] sm:$0xff] %v718_v62  ;;  %v707_v2 = vadd.f32 %v660_v35, %v522_v63  ;;  %v719_v3 = vadd.f32 %v690_v56, %v552_v0 }
 0x11b   : > { %v524_v4 = vpop.f32.mrf.mxu0  ;;  %v554_v5 = vpop.f32.mrf.mxu1 }
 0x11c   : > { %729 = vst [vmem:[%s1364_s8 + $0x28] sm:$0xff] %v707_v2  ;;  %741 = vst [vmem:[%s1364_s8 + $0x88] sm:$0xff] %v719_v3  ;;  %v708_v6 = vadd.f32 %v665_v37, %v524_v4  ;;  %v720_v7 = vadd.f32 %v695_v1, %v554_v5 }
 0x11d   : > { %v526_v8 = vpop.f32.mrf.mxu0  ;;  %v556_v9 = vpop.f32.mrf.mxu1 }
 0x11e   : > { %730 = vst [vmem:[%s1364_s8 + $0x30] sm:$0xff] %v708_v6  ;;  %742 = vst [vmem:[%s1364_s8 + $0x90] sm:$0xff] %v720_v7  ;;  %v709_v11 = vadd.f32 %v665_v37, %v526_v8  ;;  %v721_v12 = vadd.f32 %v695_v1, %v556_v9 }
 0x11f   : > { %v530_v13 = vpop.f32.mrf.mxu0  ;;  %v560_v14 = vpop.f32.mrf.mxu1 }
 0x120   : > { %731 = vst [vmem:[%s1364_s8 + $0x38] sm:$0xff] %v709_v11  ;;  %743 = vst [vmem:[%s1364_s8 + $0x98] sm:$0xff] %v721_v12  ;;  %v710_v15 = vadd.f32 %v1359_v38, %v530_v13  ;;  %v722_v16 = vadd.f32 %v700_v10, %v560_v14 }
 0x121   : > { %v532_v17 = vpop.f32.mrf.mxu0  ;;  %v562_v18 = vpop.f32.mrf.mxu1 }
 0x122   : > { %732 = vst [vmem:[%s1364_s8 + $0x40] sm:$0xff] %v710_v15  ;;  %744 = vst [vmem:[%s1364_s8 + $0xa0] sm:$0xff] %v722_v16  ;;  %v711_v19 = vadd.f32 %v1359_v38, %v532_v17  ;;  %v723_v20 = vadd.f32 %v700_v10, %v562_v18 }
 0x123   : > { %v534_v21 = vpop.f32.mrf.mxu0  ;;  %v564_v22 = vpop.f32.mrf.mxu1 }
 0x124   : > { %733 = vst [vmem:[%s1364_s8 + $0x48] sm:$0xff] %v711_v19  ;;  %745 = vst [vmem:[%s1364_s8 + $0xa8] sm:$0xff] %v723_v20  ;;  %v712_v23 = vadd.f32 %v1362_v39, %v534_v21 }
 0x125   : > { %v536_v24 = vpop.f32.mrf.mxu0  ;;  %v565_v25 = vpop.f32.mrf.mxu1 }
 0x126   : > { %734 = vst [vmem:[%s1364_s8 + $0x50] sm:$0xff] %v712_v23  ;;  %v713_v26 = vadd.f32 %v1362_v39, %v536_v24 }
 0x128   : > { %735 = vst [vmem:[%s1364_s8 + $0x58] sm:$0xff] %v713_v26 }
 0x129   : > { %1094 = shalt.err (!%p1091_p6)
}
 0x12a   : > { %s1095_s29 = scalar_lea.hbm %s1394_s15, 2816  ;;  %s1099_s5 = scalar_lea.hbm %s1450_s3, 5632 }
 0x12b   : > { %p1096_p7 = scmp.ne.s32.totalorder %s1394_s15, %s1095_s29  ;;  %p1100_p13 = scmp.lt.s32.totalorder %s1394_s15, %s1450_s3 }
 0x12c   : > { %p1101_p2 = scmp.lt.s32.totalorder %s1099_s5, %s1095_s29 }
 0x12d   : > { %p1097_p10 = pnand %p1096_p7, %p1241_p9 }
 0x12e   : > { %p1102_p8 = por %p1101_p2, %p1100_p13 }
 0x12f   : > { %p1098_p4 = pneg %p1097_p10 }
 0x131   : > { %p1103_p12 = pnand %p1102_p8, %p1098_p4 }
 0x133   : > { %1106 = shalt.err (!%p1103_p12)
}
 0x134   : > { %s1168_s8 = smov 256   ;;  %s1169_s9 = smov 16  }
 0x135   : > { %956 = dma.vmem_to_hbm [thread:$0]  (%p1241_p9), %s1396_s10, 2816, %s1394_s15, %s747_s18, %s1168_s8, %s1168_s8, %s1169_s9  }
 0x136 PF: > { %s779_s4 = sand.u32 1, %s1141_s12   ;;  %p1456_p0 = scmp.ge.s32.totalorder %s1161_s17, 2 }
 0x137   : > { %s780_s11 = scalar_lea.sflag [#allocation5], %s779_s4 }
 0x138   : > { %p963_p1 = pnand %p1456_p0, %p1248_p11 }
 0x13a   : > { %p964_p3 = pneg %p963_p1 }
 0x13c   : > { %1136 = dma.done.wait (%p964_p3), %s780_s11, 2816  }
 0x13d   : > { %1138 = vsyncadd (%p964_p3), %s780_s11, 4294964480  ;;  %s19_s17 = sadd.s32 1, %s1161_s17   ;;  %s1457_s12 = smov %s1145_s13 }
 0x13e   : > { %p16_p5 = scmp.ge.s32.totalorder %s19_s17, 4   ;;  %s1458_s13 = smov %s1149_s14 }
 0x13f   : > { %s1459_s14 = smov %s1246_s26  ;;  %s1460_s15 = smov %s1157_s16 }
 0x140   : > { %s1461_s16 = smov %s1463_s20  ;;  %18 = sbr.rel (!%p16_p5) target bundleno = 6 (0x6), region = 91 }
 0x145   :  { %785 = vsyncpa [#allocation4], 1 }
 0x146   :  { %787 = vsyncpa [#allocation4 + $0x1], 1 }
 0x147   :  { %788 = vsyncpa [#allocation5], 1 }
 0x148   :  { %790 = vsyncpa [#allocation5 + $0x1], 1 }

</bundles_post_ra>
